<compile_context>
chip_gen: v5e
topology: v5e:2x2
jax: 0.10.0
libtpu: 0.0.40
codegen_flags: <defaults>
</compile_context>

<pallas_src>
import jax
import jax.numpy as jnp
from jax.experimental import pallas as pl
from jax.experimental.pallas import tpu as pltpu


def _spike_ln_kernel(x_ref, w1_ref, b1_ref, w2_ref, b2_ref,
                     gamma_ref, beta_ref, o_ref):
    # x_ref : (TILE_R, n)  rows of the (flattened) input, feature-last.
    x = x_ref[...]
    n = x.shape[-1]
    inv_n = 1.0 / n                                   # compile-time constant

    # rmvmean = x - mean(x)   (equivalent to x @ W_rmvmean)
    mean = jnp.sum(x, axis=-1, keepdims=True) * inv_n
    rmv = x - mean

    # var = mean(rmvmean^2)   (equivalent to (rmv*rmv) @ W_var)
    var = jnp.sum(rmv * rmv, axis=-1, keepdims=True) * inv_n   # (TILE_R, 1)

    # Distilled 1/sqrt MLP:  Linear(1,H) -> ReLU -> Linear(H,1)
    w1 = w1_ref[...]          # (1, H)   pre-transposed in wrapper
    b1 = b1_ref[...]          # (1, H)
    w2 = w2_ref[...]          # (1, H)
    b2 = b2_ref[...]          # (1, 1)
    h = jnp.maximum(var * w1 + b1, 0.0)                         # (TILE_R, H)
    inv = jnp.sum(h * w2, axis=-1, keepdims=True) + b2          # (TILE_R, 1)

    prod = rmv * inv

    # X2X output encoder (fixed weights [1,-1]/[1,-1]) == relu(x) - relu(-x)
    prod = jnp.maximum(prod, 0.0) - jnp.maximum(-prod, 0.0)

    o_ref[...] = (prod * gamma_ref[...] + beta_ref[...]).astype(o_ref.dtype)


def _pick_row_tile(rows):
    if rows <= 1024:
        return rows
    for t in (1024, 512, 256, 128, 64, 32, 16, 8):
        if rows % t == 0:
            return t
    return rows


def spike_ln_forward(x, sqrtinv_w1, sqrtinv_b1, sqrtinv_w2, sqrtinv_b2,
                     gamma, beta):
    """SpikeLN.forward with use_spike=False.

    x            : (..., n)  float32
    sqrtinv_w1   : (H, 1)    torch Linear(1, H) weight
    sqrtinv_b1   : (H,)      torch Linear(1, H) bias
    sqrtinv_w2   : (1, H)    torch Linear(H, 1) weight
    sqrtinv_b2   : (1,)      torch Linear(H, 1) bias
    gamma, beta  : (n,)
    returns      : same shape as x
    """
    orig_shape = x.shape
    n = orig_shape[-1]
    H = sqrtinv_w1.shape[0]
    rows = 1
    for d in orig_shape[:-1]:
        rows *= d

    x2d = x.reshape(rows, n).astype(jnp.float32)

    # Pre-transpose / re-layout the tiny parameters once in the wrapper so the
    # kernel never does an in-VMEM transpose.
    w1 = sqrtinv_w1.reshape(1, H).astype(jnp.float32)   # (H,1) -> (1,H)
    b1 = sqrtinv_b1.reshape(1, H).astype(jnp.float32)
    w2 = sqrtinv_w2.reshape(1, H).astype(jnp.float32)
    b2 = sqrtinv_b2.reshape(1, 1).astype(jnp.float32)
    g = gamma.reshape(1, n).astype(jnp.float32)
    b = beta.reshape(1, n).astype(jnp.float32)

    tile_r = _pick_row_tile(rows)
    grid = (rows // tile_r,)

    const = lambda i: (0, 0)   # parameters: resident, never re-DMA'd

    out = pl.pallas_call(
        _spike_ln_kernel,
        out_shape=jax.ShapeDtypeStruct((rows, n), jnp.float32),
        grid_spec=pltpu.PrefetchScalarGridSpec(
            num_scalar_prefetch=0,
            grid=grid,
            in_specs=[
                pl.BlockSpec((tile_r, n), lambda i: (i, 0)),   # x rows
                pl.BlockSpec((1, H), const),                   # w1
                pl.BlockSpec((1, H), const),                   # b1
                pl.BlockSpec((1, H), const),                   # w2
                pl.BlockSpec((1, 1), const),                   # b2
                pl.BlockSpec((1, n), const),                   # gamma
                pl.BlockSpec((1, n), const),                   # beta
            ],
            out_specs=pl.BlockSpec((tile_r, n), lambda i: (i, 0)),
        ),
        compiler_params=pltpu.CompilerParams(
            dimension_semantics=("parallel",),
            vmem_limit_bytes=32 * 1024 * 1024,
        ),
    )(x2d, w1, b1, w2, b2, g, b)

    return out.reshape(orig_shape)


def _reference(x, w1, b1, w2, b2, gamma, beta):
    """Literal JAX port of the PyTorch ANN branch (matmul form)."""
    n = x.shape[-1]
    W_rmv = jnp.full((n, n), -1.0 / n)
    W_rmv = W_rmv.at[jnp.arange(n), jnp.arange(n)].set(1.0 - 1.0 / n)
    W_var = jnp.full((n, 1), 1.0 / n)
    rmv = x @ W_rmv
    var = (rmv * rmv) @ W_var
    h = jnp.maximum(var @ w1.T + b1, 0.0)       # Linear(1,H) + ReLU
    inv = h @ w2.T + b2                         # Linear(H,1)
    prod = rmv * inv
    prod = jnp.maximum(prod, 0.0) - jnp.maximum(-prod, 0.0)   # X2X encoder
    return prod * gamma + beta


if __name__ == "__main__":
    # Small shapes consistent with the module: seq=8, batch=2, hidden=32,
    # sqrtinv hidden neurons H=8 (num_neurons=8 in the spec).
    seq_len, bsz, hidden, H = 8, 2, 32, 8

    key = jax.random.PRNGKey(0)
    kx, k1, k2, k3, k4, kg, kb = jax.random.split(key, 7)

    x = jax.random.normal(kx, (seq_len, bsz, hidden), dtype=jnp.float32)

    # Synthetic deterministic stand-ins for the distilled sqrtinv weights
    # (real ones come from a .pth file -- see TODO(synk) above).
    sqrtinv_w1 = jax.random.normal(k1, (H, 1), dtype=jnp.float32) * 0.5
    sqrtinv_b1 = jax.random.normal(k2, (H,), dtype=jnp.float32) * 0.5
    sqrtinv_w2 = jax.random.normal(k3, (1, H), dtype=jnp.float32) * 0.5
    sqrtinv_b2 = jax.random.normal(k4, (1,), dtype=jnp.float32) * 0.5

    gamma = 1.0 + 0.1 * jax.random.normal(kg, (hidden,), dtype=jnp.float32)
    beta = 0.1 * jax.random.normal(kb, (hidden,), dtype=jnp.float32)

    out = spike_ln_forward(x, sqrtinv_w1, sqrtinv_b1, sqrtinv_w2, sqrtinv_b2,
                           gamma, beta)
    out = jax.block_until_ready(out)

    ref = _reference(x, sqrtinv_w1, sqrtinv_b1, sqrtinv_w2, sqrtinv_b2,
                     gamma, beta)

    assert out.shape == x.shape, out.shape
    err = float(jnp.max(jnp.abs(out - ref)))
    assert jnp.allclose(out, ref, atol=1e-4, rtol=1e-4), err

    print("KERNEL_OK")
</pallas_src>

<mosaic_0001>
module attributes {stable_mosaic.version = 11 : i64} {
  func.func @_spike_ln_kernel(%arg0: i32, %arg1: memref<16x32xf32, #tpu.memory_space<vmem>>, %arg2: memref<1x8xf32, #tpu.memory_space<vmem>>, %arg3: memref<1x8xf32, #tpu.memory_space<vmem>>, %arg4: memref<1x8xf32, #tpu.memory_space<vmem>>, %arg5: memref<1x1xf32, #tpu.memory_space<vmem>>, %arg6: memref<1x32xf32, #tpu.memory_space<vmem>>, %arg7: memref<1x32xf32, #tpu.memory_space<vmem>>, %arg8: memref<16x32xf32, #tpu.memory_space<vmem>>) attributes {dimension_semantics = [#tpu.dimension_semantics<parallel>], iteration_bounds = array<i64: 1>, scalar_prefetch = 0 : i64, scratch_operands = 0 : i64, tpu.core_type = #tpu.core_type<tc>, window_params = [{transform_indices = @transform_0, window_bounds = array<i64: 16, 32>}, {pipeline_mode = #tpu.pipeline_mode<synchronous>, transform_indices = @transform_1, window_bounds = array<i64: 1, 8>}, {pipeline_mode = #tpu.pipeline_mode<synchronous>, transform_indices = @transform_2, window_bounds = array<i64: 1, 8>}, {pipeline_mode = #tpu.pipeline_mode<synchronous>, transform_indices = @transform_3, window_bounds = array<i64: 1, 8>}, {pipeline_mode = #tpu.pipeline_mode<synchronous>, transform_indices = @transform_4, window_bounds = array<i64: 1, 1>}, {pipeline_mode = #tpu.pipeline_mode<synchronous>, transform_indices = @transform_5, window_bounds = array<i64: 1, 32>}, {pipeline_mode = #tpu.pipeline_mode<synchronous>, transform_indices = @transform_6, window_bounds = array<i64: 1, 32>}, {transform_indices = @transform_7, window_bounds = array<i64: 16, 32>}]} {
    %c0 = arith.constant 0 : index
    %c0_0 = arith.constant 0 : index
    %0 = vector.load %arg1[%c0, %c0_0] : memref<16x32xf32, #tpu.memory_space<vmem>>, vector<16x32xf32>
    %cst = arith.constant dense<0.000000e+00> : vector<16xf32>
    %1 = vector.multi_reduction <add>, %0, %cst [1] : vector<16x32xf32> to vector<16xf32>
    %2 = vector.shape_cast %1 : vector<16xf32> to vector<16x1xf32>
    %cst_1 = arith.constant 3.125000e-02 : f32
    %3 = vector.broadcast %cst_1 : f32 to vector<16x1xf32>
    %4 = arith.mulf %2, %3 : vector<16x1xf32>
    %5 = vector.broadcast %4 : vector<16x1xf32> to vector<16x32xf32>
    %6 = arith.subf %0, %5 : vector<16x32xf32>
    %7 = arith.mulf %6, %6 : vector<16x32xf32>
    %cst_2 = arith.constant dense<0.000000e+00> : vector<16xf32>
    %8 = vector.multi_reduction <add>, %7, %cst_2 [1] : vector<16x32xf32> to vector<16xf32>
    %9 = vector.shape_cast %8 : vector<16xf32> to vector<16x1xf32>
    %cst_3 = arith.constant 3.125000e-02 : f32
    %10 = vector.broadcast %cst_3 : f32 to vector<16x1xf32>
    %11 = arith.mulf %9, %10 : vector<16x1xf32>
    %c0_4 = arith.constant 0 : index
    %c0_5 = arith.constant 0 : index
    %12 = vector.load %arg2[%c0_4, %c0_5] : memref<1x8xf32, #tpu.memory_space<vmem>>, vector<1x8xf32>
    %c0_6 = arith.constant 0 : index
    %c0_7 = arith.constant 0 : index
    %13 = vector.load %arg3[%c0_6, %c0_7] : memref<1x8xf32, #tpu.memory_space<vmem>>, vector<1x8xf32>
    %c0_8 = arith.constant 0 : index
    %c0_9 = arith.constant 0 : index
    %14 = vector.load %arg4[%c0_8, %c0_9] : memref<1x8xf32, #tpu.memory_space<vmem>>, vector<1x8xf32>
    %c0_10 = arith.constant 0 : index
    %c0_11 = arith.constant 0 : index
    %15 = vector.load %arg5[%c0_10, %c0_11] : memref<1x1xf32, #tpu.memory_space<vmem>>, vector<1x1xf32>
    %16 = vector.broadcast %11 : vector<16x1xf32> to vector<16x8xf32>
    %17 = vector.broadcast %12 : vector<1x8xf32> to vector<16x8xf32>
    %18 = arith.mulf %16, %17 : vector<16x8xf32>
    %19 = vector.broadcast %13 : vector<1x8xf32> to vector<16x8xf32>
    %20 = arith.addf %18, %19 : vector<16x8xf32>
    %cst_12 = arith.constant 0.000000e+00 : f32
    %21 = vector.broadcast %cst_12 : f32 to vector<16x8xf32>
    %22 = arith.maximumf %20, %21 : vector<16x8xf32>
    %23 = vector.broadcast %14 : vector<1x8xf32> to vector<16x8xf32>
    %24 = arith.mulf %22, %23 : vector<16x8xf32>
    %cst_13 = arith.constant dense<0.000000e+00> : vector<16xf32>
    %25 = vector.multi_reduction <add>, %24, %cst_13 [1] : vector<16x8xf32> to vector<16xf32>
    %26 = vector.shape_cast %25 : vector<16xf32> to vector<16x1xf32>
    %27 = vector.broadcast %15 : vector<1x1xf32> to vector<16x1xf32>
    %28 = arith.addf %26, %27 : vector<16x1xf32>
    %29 = vector.broadcast %28 : vector<16x1xf32> to vector<16x32xf32>
    %30 = arith.mulf %6, %29 : vector<16x32xf32>
    %cst_14 = arith.constant 0.000000e+00 : f32
    %31 = vector.broadcast %cst_14 : f32 to vector<16x32xf32>
    %32 = arith.maximumf %30, %31 : vector<16x32xf32>
    %cst_15 = arith.constant 0.000000e+00 : f32
    %33 = vector.broadcast %cst_15 : f32 to vector<16x32xf32>
    %34 = arith.subf %33, %30 : vector<16x32xf32>
    %cst_16 = arith.constant 0.000000e+00 : f32
    %35 = vector.broadcast %cst_16 : f32 to vector<16x32xf32>
    %36 = arith.maximumf %34, %35 : vector<16x32xf32>
    %37 = arith.subf %32, %36 : vector<16x32xf32>
    %c0_17 = arith.constant 0 : index
    %c0_18 = arith.constant 0 : index
    %38 = vector.load %arg6[%c0_17, %c0_18] : memref<1x32xf32, #tpu.memory_space<vmem>>, vector<1x32xf32>
    %39 = vector.broadcast %38 : vector<1x32xf32> to vector<16x32xf32>
    %40 = arith.mulf %37, %39 : vector<16x32xf32>
    %c0_19 = arith.constant 0 : index
    %c0_20 = arith.constant 0 : index
    %41 = vector.load %arg7[%c0_19, %c0_20] : memref<1x32xf32, #tpu.memory_space<vmem>>, vector<1x32xf32>
    %42 = vector.broadcast %41 : vector<1x32xf32> to vector<16x32xf32>
    %43 = arith.addf %40, %42 : vector<16x32xf32>
    %c0_21 = arith.constant 0 : index
    %c0_22 = arith.constant 0 : index
    %44 = vector.load %arg8[%c0_21, %c0_22] : memref<16x32xf32, #tpu.memory_space<vmem>>, vector<16x32xf32>
    tpu.vector_store %arg8[%c0_21, %c0_22], %43 {strides = array<i32>} : memref<16x32xf32, #tpu.memory_space<vmem>>, vector<16x32xf32>,
    return
  }
  func.func @transform_0(%arg0: i32) -> (i32, i32) {
    %c0_i32 = arith.constant 0 : i32
    %c0_i32_0 = arith.constant 0 : i32
    return %arg0, %c0_i32 : i32, i32
  }
  func.func @transform_1(%arg0: i32) -> (i32, i32) {
    %c0_i32 = arith.constant 0 : i32
    %c0_i32_0 = arith.constant 0 : i32
    %c0_i32_1 = arith.constant 0 : i32
    return %c0_i32, %c0_i32_0 : i32, i32
  }
  func.func @transform_2(%arg0: i32) -> (i32, i32) {
    %c0_i32 = arith.constant 0 : i32
    %c0_i32_0 = arith.constant 0 : i32
    %c0_i32_1 = arith.constant 0 : i32
    return %c0_i32, %c0_i32_0 : i32, i32
  }
  func.func @transform_3(%arg0: i32) -> (i32, i32) {
    %c0_i32 = arith.constant 0 : i32
    %c0_i32_0 = arith.constant 0 : i32
    %c0_i32_1 = arith.constant 0 : i32
    return %c0_i32, %c0_i32_0 : i32, i32
  }
  func.func @transform_4(%arg0: i32) -> (i32, i32) {
    %c0_i32 = arith.constant 0 : i32
    %c0_i32_0 = arith.constant 0 : i32
    %c0_i32_1 = arith.constant 0 : i32
    return %c0_i32, %c0_i32_0 : i32, i32
  }
  func.func @transform_5(%arg0: i32) -> (i32, i32) {
    %c0_i32 = arith.constant 0 : i32
    %c0_i32_0 = arith.constant 0 : i32
    %c0_i32_1 = arith.constant 0 : i32
    return %c0_i32, %c0_i32_0 : i32, i32
  }
  func.func @transform_6(%arg0: i32) -> (i32, i32) {
    %c0_i32 = arith.constant 0 : i32
    %c0_i32_0 = arith.constant 0 : i32
    %c0_i32_1 = arith.constant 0 : i32
    return %c0_i32, %c0_i32_0 : i32, i32
  }
  func.func @transform_7(%arg0: i32) -> (i32, i32) {
    %c0_i32 = arith.constant 0 : i32
    %c0_i32_0 = arith.constant 0 : i32
    return %arg0, %c0_i32 : i32, i32
  }
}

</mosaic_0001>

<bundles_post_ra>
// kernel: tpu_custom_call.1
= control target key start
LH: loop header
LB: loop body
LE: loop exit
PB: predicated region body
PF: predicated region fallthrough
CT: control target
= control target key end

     0   :  { %s300_s0 = inlined_call_operand.hbm [shape: f32[16,32], index: 0, kind: input, shape index: {}]   ;;  %s301_s1 = inlined_call_operand.vmem [shape: f32[1,8], index: 1, kind: input, shape index: {}]   ;;  %s302_s2 = inlined_call_operand.vmem [shape: f32[1,8], index: 2, kind: input, shape index: {}]   ;;  %s303_s3 = inlined_call_operand.vmem [shape: f32[1,8], index: 3, kind: input, shape index: {}]   ;;  %s304_s4 = inlined_call_operand.<no memory space> [shape: f32[1,1], index: 4, kind: input, shape index: {}]   ;;  %s305_s5 = inlined_call_operand.vmem [shape: f32[1,32], index: 5, kind: input, shape index: {}]   ;;  %s306_s6 = inlined_call_operand.vmem [shape: f32[1,32], index: 6, kind: input, shape index: {}]   ;;  %s307_s7 = inlined_call_operand.hbm [shape: f32[16,32], index: 7, kind: output, shape index: {}]  }
   0x1   :  { %v12_v0 = vstv %s304_s4 }
   0x2   :  { %13 = vst [vmem:[#allocation2] sm:$0x1] %v12_v0 }
   0x3   :  { %14 = vsyncpa [#allocation4], 0 }
   0x4   :  { %15 = vsyncpa [#allocation5], 0  ;;  %s20_s28 = sshll.u32 %s300_s0, 4  ;;  %s219_s29 = smov [#allocation3]   ;;  %s21_s28 = int_to_ptr.hbm [resolvable:$true] %s20_s28 }
   0x5   :  { %s22_s30 = sshll.u32 %s219_s29, 4  ;;  %s220_s8 = smov 128   ;;  %s23_s30 = int_to_ptr.vmem [resolvable:$true] %s22_s30 }
   0x6   :  { %s221_s9 = smov 8  }
   0x7   :  { %28 = dma.hbm_to_vmem [thread:$0]  %s21_s28, 256, %s23_s30, [#allocation4], %s220_s8, %s220_s8, %s221_s9  }
   0x8   :  { %215 = dma.done.wait [#allocation4], 256  }
   0x9   :  { %216 = vsyncadd [#allocation4], 4294967040  ;;  %vm47_vm0 = vcmask 261120   ;;  %v45_v1 = vld [vmem:[#allocation3] sm:$0xff]  ;;  %v46_v3 = vld [vmem:[#allocation3 + $0x8] sm:$0xff]  ;;  %vm89_vm1 = vcmask 64512  }
   0xa   :  { %v48_v2 = vsel %vm47_vm0, %v45_v1, 0.0  ;;  %v51_v4 = vsel %vm47_vm0, %v46_v3, 0.0  ;;  %v161_v15 = vld [vmem:[%s301_s1] ss:$0 sm:$0xff]  ;;  %v222_v32 = vmov 0   ;;  %s223_s15 = smov [#allocation6]  }
   0xb   :  { %49 = vadd.xlane.f32.xlu0 %v48_v2  ;;  %v162_v18 = vld [vmem:[%s302_s2] ss:$0 sm:$0xff]  ;;  %160 = vset.pattern.permute.xlu1 %v222_v32  ;;  %s139_s16 = sshll.u32 %s223_s15, 4  ;;  %s141_s18 = sshll.u32 %s307_s7, 4  ;;  %s140_s16 = int_to_ptr.vmem [resolvable:$true] %s139_s16  ;;  %s142_s18 = int_to_ptr.hbm [resolvable:$true] %s141_s18 }
   0xc   :  { %v163_v21 = vld [vmem:[%s303_s3] ss:$0 sm:$0xff]  ;;  %159 = vset.pattern.permute.xlu0 %v222_v32 }
   0xd   :  { %v164_v33 = vld [vmem:[#allocation2] ss:$0 sm:$0xff] }
   0xe   :  { %v165_v41 = vld [vmem:[%s305_s5] ss:$0 sm:$0xff] }
   0xf   :  { %v166_v44 = vld [vmem:[%s306_s6] ss:$0 sm:$0xff] }
  0x13   :  { %52 = vadd.xlane.f32.xlu0 %v51_v4 }
  0x7e   :  { %v50_v5 = vpop.xlane.xlu0 %49 }
  0x7f   :  { %v54_v6 = vmul.f32 0.03125, %v50_v5 }
  0x81   :  { %v56_v7 = vsub.f32 %v45_v1, %v54_v6 }
  0x83   :  { %v58_v8 = vmul.f32 %v56_v7, %v56_v7 }
  0x85   :  { %v60_v9 = vsel %vm47_vm0, %v58_v8, 0.0 }
  0x86   :  { %61 = vadd.xlane.f32.xlu1 %v60_v9  ;;  %v53_v10 = vpop.xlane.xlu0 %52 }
  0x87   :  { %v55_v11 = vmul.f32 0.03125, %v53_v10 }
  0x89   :  { %v57_v12 = vsub.f32 %v46_v3, %v55_v11 }
  0x8b   :  { %v59_v13 = vmul.f32 %v57_v12, %v57_v12 }
  0x8d   :  { %v63_v14 = vsel %vm47_vm0, %v59_v13, 0.0 }
  0x8e   :  { %64 = vadd.xlane.f32.xlu1 %v63_v14 }
  0xf9   :  { %v62_v16 = vpop.xlane.xlu1 %61 }
  0xfa   :  { %v66_v17 = vmul.f32 0.03125, %v62_v16 }
  0xfc   :  { %v75_v19 = vmul.f32 %v161_v15, %v66_v17 }
  0xfe   :  { %v80_v20 = vadd.f32 %v162_v18, %v75_v19 }
 0x100   :  { %v82_v22 = vmax.f32 %v80_v20, 0.0 }
 0x101   :  { %v65_v23 = vpop.xlane.xlu1 %64 }
 0x102   :  { %v67_v24 = vmul.f32 0.03125, %v65_v23  ;;  %v87_v25 = vmul.f32 %v163_v21, %v82_v22 }
 0x104   :  { %v76_v26 = vmul.f32 %v161_v15, %v67_v24  ;;  %v90_v27 = vsel %vm89_vm1, %v87_v25, 0.0 }
 0x105   :  { %91 = vadd.xlane.f32.xlu2 %v90_v27 }
 0x106   :  { %v81_v28 = vadd.f32 %v162_v18, %v76_v26 }
 0x108   :  { %v83_v29 = vmax.f32 %v81_v28, 0.0 }
 0x10a   :  { %v88_v30 = vmul.f32 %v163_v21, %v83_v29 }
 0x10c   :  { %v93_v31 = vsel %vm89_vm1, %v88_v30, 0.0 }
 0x10d   :  { %94 = vadd.xlane.f32.xlu2 %v93_v31 }
 0x178   :  { %v92_v34 = vpop.xlane.xlu2 %91 }
 0x179   :  { %v99_v35 = vadd.f32 %v164_v33, %v92_v34 }
 0x17b   :  { %103 = vperm.xlu0 %159, %v99_v35  }
 0x180   :  { %v95_v36 = vpop.xlane.xlu2 %94 }
 0x181   :  { %v100_v37 = vadd.f32 %v164_v33, %v95_v36 }
 0x183   :  { %108 = vperm.xlu1 %160, %v100_v37  }
 0x1ed   :  { %v104_v38 = vpop.permute.xlu0 %103 }
 0x1ee   :  { %v111_v39 = vmul.f32 %v104_v38, %v56_v7 }
 0x1f0   :  { %v115_v40 = vsub.f32 0.0, %v111_v39  ;;  %v113_v42 = vmax.f32 %v111_v39, 0.0 }
 0x1f2   :  { %v117_v43 = vmax.f32 %v115_v40, 0.0 }
 0x1f4   :  { %v119_v45 = vsub.f32 %v113_v42, %v117_v43 }
 0x1f5   :  { %v109_v46 = vpop.permute.xlu1 %108 }
 0x1f6   :  { %v125_v47 = vmul.f32 %v165_v41, %v119_v45  ;;  %v112_v48 = vmul.f32 %v109_v46, %v57_v12 }
 0x1f8   :  { %v131_v49 = vadd.f32 %v166_v44, %v125_v47  ;;  %v116_v50 = vsub.f32 0.0, %v112_v48  ;;  %v114_v51 = vmax.f32 %v112_v48, 0.0 }
 0x1fa   :  { %133 = vst.msk [vmem:[#allocation6] sm:$0xff] %vm47_vm0, %v131_v49  ;;  %v118_v52 = vmax.f32 %v116_v50, 0.0 }
 0x1fc   :  { %v120_v53 = vsub.f32 %v114_v51, %v118_v52 }
 0x1fe   :  { %v126_v54 = vmul.f32 %v165_v41, %v120_v53 }
 0x200   :  { %v132_v55 = vadd.f32 %v166_v44, %v126_v54 }
 0x202   :  { %134 = vst.msk [vmem:[#allocation6 + $0x8] sm:$0xff] %vm47_vm0, %v132_v55 }
 0x203   :  { %147 = dma.vmem_to_hbm [thread:$0]  %s140_s16, 256, %s142_s18, [#allocation5], %s220_s8, %s220_s8, %s221_s9  }
 0x204   :  { %217 = dma.done.wait [#allocation5], 256  }
 0x205   :  { %218 = vsyncadd [#allocation5], 4294967040 }
 0x206   :  { %152 = vsyncpa [#allocation4], 1 }
 0x207   :  { %153 = vsyncpa [#allocation5], 1 }

</bundles_post_ra>
